<compile_context>
chip_gen: v7x
topology: tpu7x:2x2x1
jax: 0.10.0
libtpu: 0.0.40
codegen_flags: <defaults>
</compile_context>

<pallas_src>
import jax
import jax.numpy as jnp
from jax.experimental import pallas as pl
from jax.experimental.pallas import tpu as pltpu

ALPHA = 0.8
EPS = 1e-12  # matches torch.nn.functional.normalize default eps


def _inv_norm(sumsq):
    # 1 / max(||x||_2, eps)  ==  rsqrt(max(||x||_2^2, eps^2))  -- single EUP op.
    return jax.lax.rsqrt(jnp.maximum(sumsq, EPS * EPS))


def contrastive_loss_kernel(nb_ref, src_ref, tgt_ref, pos_ref, neg_ref, out_ref):
    step = pl.program_id(0)

    src = src_ref[...].astype(jnp.float32)   # (TB, D)
    tgt = tgt_ref[...].astype(jnp.float32)   # (TB, D)
    pos = pos_ref[...].astype(jnp.float32)   # (TB, P_pos, D)
    neg = neg_ref[...].astype(jnp.float32)   # (TB, P_neg, D)

    tb = src.shape[0]

    src_n = src * _inv_norm(jnp.sum(src * src, axis=1, keepdims=True))
    tgt_n = tgt * _inv_norm(jnp.sum(tgt * tgt, axis=1, keepdims=True))

    # loss_main = log(exp(diag(cos_sim(src, tgt)))) == per-row cosine.
    loss_main = jnp.sum(src_n * tgt_n, axis=1, keepdims=True)            # (TB, 1)

    # Cosine sims vs. passage banks: raw dots against normalized src, rescaled
    # by rsqrt of the per-passage squared norms (no full-bank normalization).
    src_b = src_n[:, None, :]                                            # (TB, 1, D)
    pos_sims = jnp.sum(src_b * pos, axis=-1) * _inv_norm(
        jnp.sum(pos * pos, axis=-1))                                     # (TB, P_pos)
    neg_sims = jnp.sum(src_b * neg, axis=-1) * _inv_norm(
        jnp.sum(neg * neg, axis=-1))                                     # (TB, P_neg)

    pos_score = 1.0 + jnp.sum(jnp.exp(pos_sims), axis=1, keepdims=True)  # (TB, 1)
    neg_score = jnp.sum(jnp.exp(neg_sims), axis=1, keepdims=True)        # (TB, 1)
    loss_pos = jnp.log(pos_score)
    loss_neg = jnp.log(pos_score + neg_score)

    per_row = -(ALPHA * loss_main + (1.0 - ALPHA) * (loss_pos - loss_neg))

    # Mask out padded batch rows (true batch size arrives via scalar prefetch).
    nb = nb_ref[0]
    row_ids = step * tb + jax.lax.broadcasted_iota(jnp.int32, (tb, 1), 0)
    per_row = jnp.where(row_ids < nb, per_row, 0.0)

    # Per-tile partial sum, broadcast into a lane-dense (1, 8, 128) output block
    # so the grid axis can run megacore-parallel (no cross-step accumulator).
    partial = jnp.sum(per_row)
    out_ref[...] = jnp.broadcast_to(partial, out_ref.shape).astype(jnp.float32)


def _pick_tile_b(requested, B, D, p_pos, p_neg, itemsize, budget_bytes=40 << 20):
    """Largest multiple-of-8 batch tile that keeps the VMEM working set small.

    Budget counts double-buffered inputs plus the f32 intermediates of the two
    bank expressions; 40 MiB leaves headroom on v7x's 64 MiB / TC.
    """
    per_row = 2 * 2 * D * itemsize                       # src + tgt, double-buffered
    per_row += (p_pos + p_neg) * D * (2 * itemsize + 8)  # banks: 2x in + ~2 f32 temps
    max_rows = max(8, (budget_bytes // max(per_row, 1)) // 8 * 8)
    b_pad8 = ((B + 7) // 8) * 8
    tb = min(int(requested), int(max_rows), int(b_pad8))
    return max(8, (tb // 8) * 8)


def contrastive_loss(src, tgt, pos, neg, tile_b=256):
    """Mean contrastive loss. Inputs: (B,D), (B,D), (B,P_pos,D), (B,P_neg,D)."""
    B, D = src.shape
    p_pos = pos.shape[1]
    p_neg = neg.shape[1]

    tile_b = _pick_tile_b(tile_b, B, D, p_pos, p_neg, src.dtype.itemsize)

    b_pad = ((B + tile_b - 1) // tile_b) * tile_b
    if b_pad != B:
        pad = b_pad - B
        src = jnp.pad(src, ((0, pad), (0, 0)))
        tgt = jnp.pad(tgt, ((0, pad), (0, 0)))
        pos = jnp.pad(pos, ((0, pad), (0, 0), (0, 0)))
        neg = jnp.pad(neg, ((0, pad), (0, 0), (0, 0)))

    nb = jnp.array([B], dtype=jnp.int32)
    num_tiles = b_pad // tile_b

    partials = pl.pallas_call(
        contrastive_loss_kernel,
        out_shape=jax.ShapeDtypeStruct((num_tiles, 8, 128), jnp.float32),
        grid_spec=pltpu.PrefetchScalarGridSpec(
            num_scalar_prefetch=1,
            grid=(num_tiles,),
            in_specs=[
                pl.BlockSpec((tile_b, D), lambda i, nb: (i, 0)),
                pl.BlockSpec((tile_b, D), lambda i, nb: (i, 0)),
                pl.BlockSpec((tile_b, p_pos, D), lambda i, nb: (i, 0, 0)),
                pl.BlockSpec((tile_b, p_neg, D), lambda i, nb: (i, 0, 0)),
            ],
            out_specs=pl.BlockSpec((1, 8, 128), lambda i, nb: (i, 0, 0)),
        ),
        compiler_params=pltpu.CompilerParams(
            dimension_semantics=("parallel",),
            vmem_limit_bytes=48 * 1024 * 1024,
        ),
    )(nb, src, tgt, pos, neg)

    # Final reduction + mean over the TRUE batch size happens in the wrapper so
    # the grid axis stays embarrassingly parallel.
    return jnp.sum(partials[:, 0, 0]) / jnp.float32(B)


def contrastive_loss_ref(src, tgt, pos, neg, alpha=ALPHA):
    """Pure-JAX reference mirroring the PyTorch forward."""
    def norm(x, axis):
        n = jnp.linalg.norm(x, axis=axis, keepdims=True)
        return x / jnp.maximum(n, EPS)

    src_n, tgt_n = norm(src, 1), norm(tgt, 1)
    diag = jnp.diagonal(src_n @ tgt_n.T)
    pos_n, neg_n = norm(pos, 2), norm(neg, 2)
    pos_sims = jnp.einsum("bd,bpd->bp", src_n, pos_n)
    neg_sims = jnp.einsum("bd,bpd->bp", src_n, neg_n)
    pos_score = 1.0 + jnp.sum(jnp.exp(pos_sims), axis=1)
    neg_score = jnp.sum(jnp.exp(neg_sims), axis=1)
    loss_pos = jnp.log(pos_score)
    loss_neg = jnp.log(pos_score + neg_score)
    return jnp.mean(-(alpha * diag + (1.0 - alpha) * (loss_pos - loss_neg)))


if __name__ == "__main__":
    # B deliberately not a multiple of 8 to exercise the padding / masking path;
    # D on the 128-lane axis.
    B, D, P_POS, P_NEG = 12, 128, 8, 8
    key = jax.random.PRNGKey(0)
    k1, k2, k3, k4 = jax.random.split(key, 4)
    src = jax.random.normal(k1, (B, D), dtype=jnp.float32)
    tgt = jax.random.normal(k2, (B, D), dtype=jnp.float32)
    rel = jax.random.normal(k3, (B, P_POS, D), dtype=jnp.float32)
    irr = jax.random.normal(k4, (B, P_NEG, D), dtype=jnp.float32)

    loss = jax.block_until_ready(contrastive_loss(src, tgt, rel, irr))
    ref = jax.block_until_ready(contrastive_loss_ref(src, tgt, rel, irr))
    assert jnp.allclose(loss, ref, atol=1e-5, rtol=1e-5), (loss, ref)
    print("KERNEL_OK")
</pallas_src>

<mosaic_0001>
module attributes {stable_mosaic.version = 11 : i64} {
  func.func @contrastive_loss_kernel(%arg0: i32, %arg1: memref<1xi32, #tpu.memory_space<smem>>, %arg2: memref<16x128xf32, #tpu.memory_space<vmem>>, %arg3: memref<16x128xf32, #tpu.memory_space<vmem>>, %arg4: memref<16x8x128xf32, #tpu.memory_space<vmem>>, %arg5: memref<16x8x128xf32, #tpu.memory_space<vmem>>, %arg6: memref<1x8x128xf32, #tpu.memory_space<vmem>>) attributes {dimension_semantics = [#tpu.dimension_semantics<parallel>], iteration_bounds = array<i64: 1>, scalar_prefetch = 1 : i64, scratch_operands = 0 : i64, tpu.core_type = #tpu.core_type<tc>, window_params = [{transform_indices = @transform_0, window_bounds = array<i64: 16, 128>}, {transform_indices = @transform_1, window_bounds = array<i64: 16, 128>}, {transform_indices = @transform_2, window_bounds = array<i64: 16, 8, 128>}, {transform_indices = @transform_3, window_bounds = array<i64: 16, 8, 128>}, {transform_indices = @transform_4, window_bounds = array<i64: 1, 8, 128>}]} {
    %c0 = arith.constant 0 : index
    %c0_0 = arith.constant 0 : index
    %0 = vector.load %arg2[%c0, %c0_0] : memref<16x128xf32, #tpu.memory_space<vmem>>, vector<16x128xf32>
    %c0_1 = arith.constant 0 : index
    %c0_2 = arith.constant 0 : index
    %1 = vector.load %arg3[%c0_1, %c0_2] : memref<16x128xf32, #tpu.memory_space<vmem>>, vector<16x128xf32>
    %c0_3 = arith.constant 0 : index
    %c0_4 = arith.constant 0 : index
    %c0_5 = arith.constant 0 : index
    %2 = vector.load %arg4[%c0_3, %c0_4, %c0_5] : memref<16x8x128xf32, #tpu.memory_space<vmem>>, vector<16x8x128xf32>
    %c0_6 = arith.constant 0 : index
    %c0_7 = arith.constant 0 : index
    %c0_8 = arith.constant 0 : index
    %3 = vector.load %arg5[%c0_6, %c0_7, %c0_8] : memref<16x8x128xf32, #tpu.memory_space<vmem>>, vector<16x8x128xf32>
    %4 = arith.mulf %0, %0 : vector<16x128xf32>
    %cst = arith.constant dense<0.000000e+00> : vector<16xf32>
    %5 = vector.multi_reduction <add>, %4, %cst [1] : vector<16x128xf32> to vector<16xf32>
    %6 = vector.shape_cast %5 : vector<16xf32> to vector<16x1xf32>
    %cst_9 = arith.constant 1.000000e-24 : f32
    %7 = vector.broadcast %cst_9 : f32 to vector<16x1xf32>
    %8 = arith.maximumf %6, %7 : vector<16x1xf32>
    %9 = math.rsqrt %8 : vector<16x1xf32>
    %10 = vector.broadcast %9 : vector<16x1xf32> to vector<16x128xf32>
    %11 = arith.mulf %0, %10 : vector<16x128xf32>
    %12 = arith.mulf %1, %1 : vector<16x128xf32>
    %cst_10 = arith.constant dense<0.000000e+00> : vector<16xf32>
    %13 = vector.multi_reduction <add>, %12, %cst_10 [1] : vector<16x128xf32> to vector<16xf32>
    %14 = vector.shape_cast %13 : vector<16xf32> to vector<16x1xf32>
    %cst_11 = arith.constant 1.000000e-24 : f32
    %15 = vector.broadcast %cst_11 : f32 to vector<16x1xf32>
    %16 = arith.maximumf %14, %15 : vector<16x1xf32>
    %17 = math.rsqrt %16 : vector<16x1xf32>
    %18 = vector.broadcast %17 : vector<16x1xf32> to vector<16x128xf32>
    %19 = arith.mulf %1, %18 : vector<16x128xf32>
    %20 = arith.mulf %11, %19 : vector<16x128xf32>
    %cst_12 = arith.constant dense<0.000000e+00> : vector<16xf32>
    %21 = vector.multi_reduction <add>, %20, %cst_12 [1] : vector<16x128xf32> to vector<16xf32>
    %22 = vector.shape_cast %21 : vector<16xf32> to vector<16x1xf32>
    %23 = vector.shape_cast %11 : vector<16x128xf32> to vector<16x1x128xf32>
    %24 = vector.broadcast %23 : vector<16x1x128xf32> to vector<16x8x128xf32>
    %25 = arith.mulf %24, %2 : vector<16x8x128xf32>
    %cst_13 = arith.constant dense<0.000000e+00> : vector<16x8xf32>
    %26 = vector.multi_reduction <add>, %25, %cst_13 [2] : vector<16x8x128xf32> to vector<16x8xf32>
    %27 = arith.mulf %2, %2 : vector<16x8x128xf32>
    %cst_14 = arith.constant dense<0.000000e+00> : vector<16x8xf32>
    %28 = vector.multi_reduction <add>, %27, %cst_14 [2] : vector<16x8x128xf32> to vector<16x8xf32>
    %cst_15 = arith.constant 1.000000e-24 : f32
    %29 = vector.broadcast %cst_15 : f32 to vector<16x8xf32>
    %30 = arith.maximumf %28, %29 : vector<16x8xf32>
    %31 = math.rsqrt %30 : vector<16x8xf32>
    %32 = arith.mulf %26, %31 : vector<16x8xf32>
    %33 = vector.broadcast %23 : vector<16x1x128xf32> to vector<16x8x128xf32>
    %34 = arith.mulf %33, %3 : vector<16x8x128xf32>
    %cst_16 = arith.constant dense<0.000000e+00> : vector<16x8xf32>
    %35 = vector.multi_reduction <add>, %34, %cst_16 [2] : vector<16x8x128xf32> to vector<16x8xf32>
    %36 = arith.mulf %3, %3 : vector<16x8x128xf32>
    %cst_17 = arith.constant dense<0.000000e+00> : vector<16x8xf32>
    %37 = vector.multi_reduction <add>, %36, %cst_17 [2] : vector<16x8x128xf32> to vector<16x8xf32>
    %cst_18 = arith.constant 1.000000e-24 : f32
    %38 = vector.broadcast %cst_18 : f32 to vector<16x8xf32>
    %39 = arith.maximumf %37, %38 : vector<16x8xf32>
    %40 = math.rsqrt %39 : vector<16x8xf32>
    %41 = arith.mulf %35, %40 : vector<16x8xf32>
    %42 = math.exp %32 : vector<16x8xf32>
    %cst_19 = arith.constant dense<0.000000e+00> : vector<16xf32>
    %43 = vector.multi_reduction <add>, %42, %cst_19 [1] : vector<16x8xf32> to vector<16xf32>
    %44 = vector.shape_cast %43 : vector<16xf32> to vector<16x1xf32>
    %cst_20 = arith.constant 1.000000e+00 : f32
    %45 = vector.broadcast %cst_20 : f32 to vector<16x1xf32>
    %46 = arith.addf %45, %44 : vector<16x1xf32>
    %47 = math.exp %41 : vector<16x8xf32>
    %cst_21 = arith.constant dense<0.000000e+00> : vector<16xf32>
    %48 = vector.multi_reduction <add>, %47, %cst_21 [1] : vector<16x8xf32> to vector<16xf32>
    %49 = vector.shape_cast %48 : vector<16xf32> to vector<16x1xf32>
    %50 = math.log %46 : vector<16x1xf32>
    %51 = arith.addf %46, %49 : vector<16x1xf32>
    %52 = math.log %51 : vector<16x1xf32>
    %cst_22 = arith.constant 8.000000e-01 : f32
    %53 = vector.broadcast %cst_22 : f32 to vector<16x1xf32>
    %54 = arith.mulf %53, %22 : vector<16x1xf32>
    %55 = arith.subf %50, %52 : vector<16x1xf32>
    %cst_23 = arith.constant 2.000000e-01 : f32
    %56 = vector.broadcast %cst_23 : f32 to vector<16x1xf32>
    %57 = arith.mulf %56, %55 : vector<16x1xf32>
    %58 = arith.addf %54, %57 : vector<16x1xf32>
    %cst_24 = arith.constant 0.000000e+00 : f32
    %59 = vector.broadcast %cst_24 : f32 to vector<16x1xf32>
    %60 = arith.subf %59, %58 : vector<16x1xf32>
    %c0_25 = arith.constant 0 : index
    %61 = memref.load %arg1[%c0_25] : memref<1xi32, #tpu.memory_space<smem>>
    %c16_i32 = arith.constant 16 : i32
    %62 = arith.muli %arg0, %c16_i32 : i32
    %63 = tpu.iota {dimensions = array<i32: 0>} : vector<16x1xi32>
    %64 = vector.broadcast %62 : i32 to vector<16x1xi32>
    %65 = arith.addi %64, %63 : vector<16x1xi32>
    %66 = vector.broadcast %61 : i32 to vector<16x1xi32>
    %67 = arith.cmpi slt, %65, %66 : vector<16x1xi32>
    %cst_26 = arith.constant 0.000000e+00 : f32
    %68 = vector.broadcast %cst_26 : f32 to vector<16x1xf32>
    %69 = arith.select %67, %60, %68 : vector<16x1xi1>, vector<16x1xf32>
    %70 = vector.shape_cast %69 : vector<16x1xf32> to vector<1x16x1xf32>
    %cst_27 = arith.constant dense<0.000000e+00> : vector<1xf32>
    %71 = vector.multi_reduction <add>, %70, %cst_27 [1, 2] : vector<1x16x1xf32> to vector<1xf32>
    %72 = vector.shape_cast %71 : vector<1xf32> to vector<1x1x1xf32>
    %73 = vector.extract %72[0, 0, 0] : f32 from vector<1x1x1xf32>
    %74 = vector.broadcast %73 : f32 to vector<1x8x128xf32>
    %c0_28 = arith.constant 0 : index
    %c0_29 = arith.constant 0 : index
    %c0_30 = arith.constant 0 : index
    %75 = vector.load %arg6[%c0_28, %c0_29, %c0_30] : memref<1x8x128xf32, #tpu.memory_space<vmem>>, vector<1x8x128xf32>
    tpu.vector_store %arg6[%c0_28, %c0_29, %c0_30], %74 {strides = array<i32>} : memref<1x8x128xf32, #tpu.memory_space<vmem>>, vector<1x8x128xf32>,
    return
  }
  func.func @transform_0(%arg0: i32, %arg1: memref<1xi32, #tpu.memory_space<smem>>) -> (i32, i32) {
    %c0_i32 = arith.constant 0 : i32
    %c0_i32_0 = arith.constant 0 : i32
    return %arg0, %c0_i32 : i32, i32
  }
  func.func @transform_1(%arg0: i32, %arg1: memref<1xi32, #tpu.memory_space<smem>>) -> (i32, i32) {
    %c0_i32 = arith.constant 0 : i32
    %c0_i32_0 = arith.constant 0 : i32
    return %arg0, %c0_i32 : i32, i32
  }
  func.func @transform_2(%arg0: i32, %arg1: memref<1xi32, #tpu.memory_space<smem>>) -> (i32, i32, i32) {
    %c0_i32 = arith.constant 0 : i32
    %c0_i32_0 = arith.constant 0 : i32
    %c0_i32_1 = arith.constant 0 : i32
    return %arg0, %c0_i32, %c0_i32_0 : i32, i32, i32
  }
  func.func @transform_3(%arg0: i32, %arg1: memref<1xi32, #tpu.memory_space<smem>>) -> (i32, i32, i32) {
    %c0_i32 = arith.constant 0 : i32
    %c0_i32_0 = arith.constant 0 : i32
    %c0_i32_1 = arith.constant 0 : i32
    return %arg0, %c0_i32, %c0_i32_0 : i32, i32, i32
  }
  func.func @transform_4(%arg0: i32, %arg1: memref<1xi32, #tpu.memory_space<smem>>) -> (i32, i32, i32) {
    %c0_i32 = arith.constant 0 : i32
    %c0_i32_0 = arith.constant 0 : i32
    %c0_i32_1 = arith.constant 0 : i32
    return %arg0, %c0_i32, %c0_i32_0 : i32, i32, i32
  }
}

</mosaic_0001>

<bundles_post_ra>
// kernel: tpu_custom_call.1
= control target key start
LH: loop header
LB: loop body
LE: loop exit
PB: predicated region body
PF: predicated region fallthrough
CT: control target
= control target key end

     0   :  { %11 = vsyncpa [#allocation5], 0  ;;  %s1760_s0 = inlined_call_operand.<no memory space> [shape: s32[1], index: 0, kind: input, shape index: {}]   ;;  %s1761_s1 = inlined_call_operand.hbm [shape: f32[16,128], index: 1, kind: input, shape index: {}]   ;;  %s1762_s2 = inlined_call_operand.hbm [shape: f32[16,128], index: 2, kind: input, shape index: {}]   ;;  %s1763_s3 = inlined_call_operand.hbm [shape: f32[16,8,128], index: 3, kind: input, shape index: {}]   ;;  %s1764_s4 = inlined_call_operand.hbm [shape: f32[16,8,128], index: 4, kind: input, shape index: {}]   ;;  %s1765_s5 = inlined_call_operand.hbm [shape: f32[1,8,128], index: 5, kind: output, shape index: {}]  }
   0x1   :  { %12 = vsyncpa [#allocation8], 0 }
   0x2   :  { %13 = vsyncpa [#allocation11], 0 }
   0x3   :  { %14 = vsyncpa [#allocation6], 0  ;;  %s1226_s18 = smov [#allocation7]   ;;  %s1227_s20 = smov [#allocation4]  }
   0x4   :  { %s32_s19 = sshll.u32 %s1226_s18, 4  ;;  %s20_s21 = sshll.u32 %s1227_s20, 4  ;;  %s33_s19 = int_to_ptr.vmem [resolvable:$true] %s32_s19  ;;  %s1264_s21 = int_to_ptr.vmem [resolvable:$true] %s20_s21 }
   0x5   :  { %s1108_s24 = scalar_lea.hbm %s1762_s2, 256 }
   0x6   :  { %p1109_p0 = scmp.ne.s32.totalorder %s1762_s2, %s1108_s24  ;;  %p1112_p1 = scmp.lt.u32.totalorder %s1108_s24, %s1762_s2 }
   0x8   :  { %p1114_p2 = pnand %p1112_p1, %p1109_p0 }
   0xa   :  { %1117 = shalt.err (!%p1114_p2)
}
   0xb   :  { %s1118_s29 = scalar_lea.vmem %s33_s19, 256  ;;  %p1123_p4 = scmp.lt.s32.totalorder %s33_s19, %s33_s19 }
   0xc   :  { %p1119_p3 = scmp.ne.s32.totalorder %s33_s19, %s1118_s29  ;;  %p1124_p5 = scmp.lt.s32.totalorder %s1118_s29, %s1118_s29 }
   0xe   :  { %p1125_p6 = por %p1124_p5, %p1123_p4 }
  0x10   :  { %p1126_p7 = pnand %p1125_p6, %p1119_p3 }
  0x12   :  { %1129 = shalt.err (!%p1126_p7)
}
  0x13   :  { %s1228_s30 = smov 128   ;;  %s1229_s6 = smov 8  }
  0x14   :  { %38 = dma.hbm_to_vmem [thread:$0]  %s1762_s2, 256, %s33_s19, [#allocation8], %s1228_s30, %s1228_s30, %s1229_s6  }
  0x15   :  { %s1130_s11 = scalar_lea.hbm %s1761_s1, 256 }
  0x16   :  { %p1131_p8 = scmp.ne.s32.totalorder %s1761_s1, %s1130_s11  ;;  %p1134_p9 = scmp.lt.u32.totalorder %s1130_s11, %s1761_s1 }
  0x18   :  { %p1136_p10 = pnand %p1134_p9, %p1131_p8 }
  0x1a   :  { %1139 = shalt.err (!%p1136_p10)
}
  0x1b   :  { %s1140_s16 = scalar_lea.vmem %s1264_s21, 256  ;;  %p1145_p12 = scmp.lt.s32.totalorder %s1264_s21, %s1264_s21 }
  0x1c   :  { %p1141_p11 = scmp.ne.s32.totalorder %s1264_s21, %s1140_s16  ;;  %p1146_p13 = scmp.lt.s32.totalorder %s1140_s16, %s1140_s16 }
  0x1e   :  { %p1147_p0 = por %p1146_p13, %p1145_p12 }
  0x20   :  { %p1148_p1 = pnand %p1147_p0, %p1141_p11 }
  0x22   :  { %1151 = shalt.err (!%p1148_p1)
}
  0x23   :  { %26 = dma.hbm_to_vmem [thread:$0]  %s1761_s1, 256, %s1264_s21, [#allocation5], %s1228_s30, %s1228_s30, %s1229_s6  }
  0x24   :  { %s1230_s18 = smov [#allocation9]   ;;  %s1231_s20 = smov [#allocation10]  }
  0x25   :  { %s44_s19 = sshll.u32 %s1230_s18, 4  ;;  %s56_s22 = sshll.u32 %s1231_s20, 4  ;;  %s45_s19 = int_to_ptr.vmem [resolvable:$true] %s44_s19  ;;  %s1301_s22 = int_to_ptr.vmem [resolvable:$true] %s56_s22 }
  0x26   :  { %s1152_s25 = scalar_lea.hbm %s1763_s3, 2048 }
  0x27   :  { %p1153_p2 = scmp.ne.s32.totalorder %s1763_s3, %s1152_s25  ;;  %p1156_p3 = scmp.lt.u32.totalorder %s1152_s25, %s1763_s3 }
  0x29   :  { %p1158_p4 = pnand %p1156_p3, %p1153_p2 }
  0x2b   :  { %1161 = shalt.err (!%p1158_p4)
}
  0x2c   :  { %s1162_s1 = scalar_lea.vmem %s45_s19, 2048  ;;  %p1167_p6 = scmp.lt.s32.totalorder %s45_s19, %s45_s19 }
  0x2d   :  { %p1163_p5 = scmp.ne.s32.totalorder %s45_s19, %s1162_s1  ;;  %p1168_p7 = scmp.lt.s32.totalorder %s1162_s1, %s1162_s1 }
  0x2f   :  { %p1169_p8 = por %p1168_p7, %p1167_p6 }
  0x31   :  { %p1170_p9 = pnand %p1169_p8, %p1163_p5 }
  0x33   :  { %1173 = shalt.err (!%p1170_p9)
}
  0x34   :  { %50 = dma.hbm_to_vmem [thread:$0]  %s1763_s3, 2048, %s45_s19, [#allocation8], %s1228_s30, %s1228_s30, %s1229_s6  }
  0x35   :  { %s1174_s10 = scalar_lea.hbm %s1764_s4, 2048 }
  0x36   :  { %p1175_p10 = scmp.ne.s32.totalorder %s1764_s4, %s1174_s10  ;;  %p1178_p11 = scmp.lt.u32.totalorder %s1174_s10, %s1764_s4 }
  0x38   :  { %p1180_p12 = pnand %p1178_p11, %p1175_p10 }
  0x3a   :  { %1183 = shalt.err (!%p1180_p12)
}
  0x3b   :  { %s1184_s15 = scalar_lea.vmem %s1301_s22, 2048  ;;  %p1189_p0 = scmp.lt.s32.totalorder %s1301_s22, %s1301_s22 }
  0x3c   :  { %p1185_p13 = scmp.ne.s32.totalorder %s1301_s22, %s1184_s15  ;;  %p1190_p1 = scmp.lt.s32.totalorder %s1184_s15, %s1184_s15 }
  0x3e   :  { %p1191_p2 = por %p1190_p1, %p1189_p0 }
  0x40   :  { %p1192_p3 = pnand %p1191_p2, %p1185_p13 }
  0x42   :  { %1195 = shalt.err (!%p1192_p3)
}
  0x43   :  { %62 = dma.hbm_to_vmem [thread:$0]  %s1764_s4, 2048, %s1301_s22, [#allocation11], %s1228_s30, %s1228_s30, %s1229_s6  }
  0x44   :  { %1218 = dma.done.wait [#allocation5], 256  }
  0x45   :  { %1219 = vsyncadd [#allocation5], 4294967040 }
  0x46   :  { %1220 = dma.done.wait [#allocation8], 2304  }
  0x47   :  { %1221 = vsyncadd [#allocation8], 4294964992 }
  0x48   :  { %1222 = dma.done.wait [#allocation11], 2048  }
  0x49   :  { %1223 = vsyncadd [#allocation11], 4294965248  ;;  %v1338_v0 = vld [vmem:[#allocation4] sm:$0xff]  ;;  %v1340_v1 = vld [vmem:[#allocation4 + $0x8] sm:$0xff]  ;;  %vm723_vm0 = vcmask 1041409   ;;  %vm725_vm1 = vcmask 1042434  }
  0x4a   :  { %v1342_v2 = vld [vmem:[#allocation9] sm:$0xff]  ;;  %v111_v3 = vmul.f32 %v1338_v0, %v1338_v0  ;;  %v1348_v5 = vld [vmem:[#allocation9 + $0x8] sm:$0xff]  ;;  %v112_v6 = vmul.f32 %v1340_v1, %v1340_v1  ;;  %v1362_v12 = vld [vmem:[#allocation9 + $0x10] sm:$0xff]  ;;  %vm727_vm2 = vcmask 1043459   ;;  %vm729_vm3 = vcmask 1044484  }
  0x4b   :  { %v369_v4 = vmul.f32 %v1342_v2, %v1342_v2  ;;  %v370_v7 = vmul.f32 %v1348_v5, %v1348_v5  ;;  %v1354_v8 = vld [vmem:[#allocation9 + $0x40] sm:$0xff]  ;;  %v1356_v9 = vld [vmem:[#allocation9 + $0x48] sm:$0xff]  ;;  %v1364_v13 = vld [vmem:[#allocation9 + $0x50] sm:$0xff]  ;;  %v371_v14 = vmul.f32 %v1362_v12, %v1362_v12  ;;  %vm731_vm4 = vcmask 1045509  }
  0x4c   :  { %113 = vadd.xlane.f32.xlu0 %v111_v3  ;;  %v377_v10 = vmul.f32 %v1354_v8, %v1354_v8  ;;  %v378_v11 = vmul.f32 %v1356_v9, %v1356_v9  ;;  %v379_v15 = vmul.f32 %v1364_v13, %v1364_v13  ;;  %v1370_v16 = vld [vmem:[#allocation9 + $0x18] sm:$0xff]  ;;  %v1378_v20 = vld [vmem:[#allocation10] sm:$0xff]  ;;  %v1380_v21 = vld [vmem:[#allocation10 + $0x8] sm:$0xff]  ;;  %vm733_vm5 = vcmask 1046534  }
  0x4d   :  { %385 = vadd.xlane.f32.xlu1 %v369_v4  ;;  %v1372_v17 = vld [vmem:[#allocation9 + $0x58] sm:$0xff]  ;;  %v372_v18 = vmul.f32 %v1370_v16, %v1370_v16  ;;  %v513_v22 = vmul.f32 %v1378_v20, %v1378_v20  ;;  %v514_v23 = vmul.f32 %v1380_v21, %v1380_v21  ;;  %v1386_v24 = vld [vmem:[#allocation10 + $0x40] sm:$0xff]  ;;  %v1388_v25 = vld [vmem:[#allocation10 + $0x48] sm:$0xff]  ;;  %vm735_vm6 = vcmask 1047559  }
  0x4e   :  { %v380_v19 = vmul.f32 %v1372_v17, %v1372_v17  ;;  %v521_v26 = vmul.f32 %v1386_v24, %v1386_v24  ;;  %v522_v27 = vmul.f32 %v1388_v25, %v1388_v25  ;;  %v1394_v28 = vld [vmem:[#allocation9 + $0x20] sm:$0xff]  ;;  %v1402_v32 = vld [vmem:[#allocation10 + $0x10] sm:$0xff]  ;;  %v1410_v36 = vld [vmem:[#allocation9 + $0x28] sm:$0xff]  ;;  %vm746_vm7 = vcmask 64512  }
  0x4f   :  { %v1396_v29 = vld [vmem:[#allocation9 + $0x60] sm:$0xff]  ;;  %v373_v30 = vmul.f32 %v1394_v28, %v1394_v28  ;;  %v1404_v33 = vld [vmem:[#allocation10 + $0x50] sm:$0xff]  ;;  %v515_v34 = vmul.f32 %v1402_v32, %v1402_v32  ;;  %v1412_v37 = vld [vmem:[#allocation9 + $0x68] sm:$0xff]  ;;  %v374_v38 = vmul.f32 %v1410_v36, %v1410_v36  ;;  %vm922_vm10 = vcmask 7168  }
  0x50   :  { %115 = vadd.xlane.f32.xlu0 %v112_v6  ;;  %v381_v31 = vmul.f32 %v1396_v29, %v1396_v29  ;;  %v523_v35 = vmul.f32 %v1404_v33, %v1404_v33  ;;  %v382_v39 = vmul.f32 %v1412_v37, %v1412_v37  ;;  %v1418_v40 = vld [vmem:[#allocation10 + $0x18] sm:$0xff]  ;;  %v1426_v44 = vld [vmem:[#allocation9 + $0x30] sm:$0xff]  ;;  %v1434_v48 = vld [vmem:[#allocation10 + $0x20] sm:$0xff] }
  0x51   :  { %387 = vadd.xlane.f32.xlu1 %v370_v7  ;;  %v1420_v41 = vld [vmem:[#allocation10 + $0x58] sm:$0xff]  ;;  %v516_v42 = vmul.f32 %v1418_v40, %v1418_v40  ;;  %v1428_v45 = vld [vmem:[#allocation9 + $0x70] sm:$0xff]  ;;  %v375_v46 = vmul.f32 %v1426_v44, %v1426_v44  ;;  %v1436_v49 = vld [vmem:[#allocation10 + $0x60] sm:$0xff]  ;;  %v517_v50 = vmul.f32 %v1434_v48, %v1434_v48 }
  0x52   :  { %v524_v43 = vmul.f32 %v1420_v41, %v1420_v41  ;;  %v383_v47 = vmul.f32 %v1428_v45, %v1428_v45  ;;  %v525_v51 = vmul.f32 %v1436_v49, %v1436_v49  ;;  %v1442_v52 = vld [vmem:[#allocation9 + $0x38] sm:$0xff]  ;;  %v1450_v56 = vld [vmem:[#allocation10 + $0x28] sm:$0xff]  ;;  %v1458_v60 = vld [vmem:[#allocation10 + $0x30] sm:$0xff] }
  0x53   :  { %v1444_v53 = vld [vmem:[#allocation9 + $0x78] sm:$0xff]  ;;  %v376_v54 = vmul.f32 %v1442_v52, %v1442_v52  ;;  %v1452_v57 = vld [vmem:[#allocation10 + $0x68] sm:$0xff]  ;;  %v518_v58 = vmul.f32 %v1450_v56, %v1450_v56  ;;  %v1460_v61 = vld [vmem:[#allocation10 + $0x70] sm:$0xff]  ;;  %v519_v62 = vmul.f32 %v1458_v60, %v1458_v60 }
  0x54   :  { %401 = vadd.xlane.f32.xlu0 %v377_v10  ;;  %v384_v55 = vmul.f32 %v1444_v53, %v1444_v53  ;;  %v526_v59 = vmul.f32 %v1452_v57, %v1452_v57  ;;  %v527_v63 = vmul.f32 %v1460_v61, %v1460_v61  ;;  %v1466_v3 = vld [vmem:[#allocation10 + $0x38] sm:$0xff] }
  0x55   :  { %403 = vadd.xlane.f32.xlu1 %v378_v11  ;;  %v1468_v4 = vld [vmem:[#allocation10 + $0x78] sm:$0xff]  ;;  %v520_v6 = vmul.f32 %v1466_v3, %v1466_v3 }
  0x56   :  { %v528_v7 = vmul.f32 %v1468_v4, %v1468_v4 }
  0x58   :  { %389 = vadd.xlane.f32.xlu0 %v371_v14 }
  0x59   :  { %405 = vadd.xlane.f32.xlu1 %v379_v15  ;;  %v1232_v15 = vmov 1966171168  }
  0x5c   :  { %391 = vadd.xlane.f32.xlu0 %v372_v18  ;;  %v145_v18 = vunpack.c.l.s4 %v1232_v15 }
  0x5d   :  { %407 = vadd.xlane.f32.xlu1 %v380_v19  ;;  %v147_v19 = vlaneseq }
  0x60   :  { %529 = vadd.xlane.f32.xlu0 %v513_v22 }
  0x61   :  { %531 = vadd.xlane.f32.xlu1 %v514_v23  ;;  %v146_v23 = vunpack.c.0.s8 %v145_v18 }
  0x64   :  { %545 = vadd.xlane.f32.xlu0 %v521_v26  ;;  %v1475_v26 = vshrl.u32 %v147_v19, 7 }
  0x65   :  { %547 = vadd.xlane.f32.xlu1 %v522_v27 }
  0x66   :  { %v1478_v27 = vsub.s32 %v146_v23, %v1475_v26 }
  0x68   :  { %393 = vadd.xlane.f32.xlu0 %v373_v30 }
  0x69   :  { %409 = vadd.xlane.f32.xlu1 %v381_v31 }
  0x6c   :  { %533 = vadd.xlane.f32.xlu0 %v515_v34 }
  0x6d   :  { %549 = vadd.xlane.f32.xlu1 %v523_v35  ;;  %v1486_v35 = vsub.s32 0, %v1475_v26 }
  0x70   :  { %395 = vadd.xlane.f32.xlu0 %v374_v38 }
  0x71   :  { %411 = vadd.xlane.f32.xlu1 %v382_v39 }
  0x74   :  { %535 = vadd.xlane.f32.xlu0 %v516_v42 }
  0x75   :  { %551 = vadd.xlane.f32.xlu1 %v524_v43 }
  0x78   :  { %397 = vadd.xlane.f32.xlu0 %v375_v46 }
  0x79   :  { %413 = vadd.xlane.f32.xlu1 %v383_v47 }
  0x7c   :  { %537 = vadd.xlane.f32.xlu0 %v517_v50 }
  0x7d   :  { %553 = vadd.xlane.f32.xlu1 %v525_v51 }
  0x80   :  { %399 = vadd.xlane.f32.xlu0 %v376_v54 }
  0x81   :  { %415 = vadd.xlane.f32.xlu1 %v384_v55 }
  0x84   :  { %539 = vadd.xlane.f32.xlu0 %v518_v58 }
  0x85   :  { %555 = vadd.xlane.f32.xlu1 %v526_v59 }
  0x88   :  { %541 = vadd.xlane.f32.xlu0 %v519_v62 }
  0x89   :  { %557 = vadd.xlane.f32.xlu1 %v527_v63 }
  0x8c   :  { %543 = vadd.xlane.f32.xlu0 %v520_v6 }
  0x8d   :  { %559 = vadd.xlane.f32.xlu1 %v528_v7 }
  0xd9   :  { %v114_v10 = vpop.xlane.xlu0 %113 }
  0xda   :  { %v117_v11 = vmax.f32 %v114_v10, 1e-24 }
  0xdc   :  { %964 = vrsqrt.f32 %v117_v11 }
  0xdd   :  { %v116_v14 = vpop.xlane.xlu0 %115 }
  0xde   :  { %v118_v22 = vmax.f32 %v116_v14, 1e-24 }
  0xe0   :  { %966 = vrsqrt.f32 %v118_v22 }
  0xe6   :  { %v965_v30 = vpop.eup %964 }
  0xe7   :  { %v1481_v31 = vmul.f32 %v965_v30, %v1338_v0 }
  0xe9   :  { %v150_v34 = vrot.slane %v1481_v31, %v1478_v27 }
  0xea   :  { %v967_v38 = vpop.eup %966 }
  0xeb   :  { %v166_v39 = vrot.slane %v150_v34, %v1478_v27  ;;  %v158_v42 = vcombine.high %v150_v34, %v150_v34  ;;  %v1490_v43 = vmul.f32 %v967_v38, %v1340_v1 }
  0xed   :  { %v244_v46 = vrot.slane %v166_v39, %v1486_v35  ;;  %v180_v47 = vrot.slane %v158_v42, %v1478_v27  ;;  %v199_v0 = vrot.slane %v1490_v43, %v1478_v27  ;;  %v188_v14 = vcombine.high %v166_v39, %v166_v39 }
  0xef   :  { %v321_v50 = vmul.f32 %v244_v46, %v1342_v2  ;;  %v248_v51 = vrot.slane %v180_v47, %v1486_v35  ;;  %v215_v54 = vrot.slane %v199_v0, %v1478_v27  ;;  %v207_v55 = vcombine.high %v199_v0, %v199_v0 }
  0xf0   :  { %v143_v2 = vcombine.high %v1481_v31, %v1481_v31  ;;  %v465_v11 = vmul.f32 %v244_v46, %v1378_v20  ;;  %v190_v46 = vcombine.high %v180_v47, %v180_v47 }
  0xf1   :  { %337 = vadd.xlane.f32.xlu0 %v321_v50  ;;  %v322_v58 = vmul.f32 %v248_v51, %v1348_v5  ;;  %v276_v1 = vrot.slane %v215_v54, %v1486_v35  ;;  %v229_v59 = vrot.slane %v207_v55, %v1478_v27  ;;  %v237_v62 = vcombine.high %v215_v54, %v215_v54 }
  0xf2   :  { %v192_v5 = vcombine.high %v1490_v43, %v1490_v43  ;;  %v157_v15 = vrot.slane %v143_v2, %v1478_v27  ;;  %v466_v30 = vmul.f32 %v248_v51, %v1380_v21  ;;  %v256_v54 = vrot.slane %v190_v46, %v1486_v35 }
  0xf3   :  { %339 = vadd.xlane.f32.xlu1 %v322_v58  ;;  %v329_v63 = vmul.f32 %v276_v1, %v1354_v8  ;;  %v280_v6 = vrot.slane %v229_v59, %v1486_v35  ;;  %v284_v10 = vrot.slane %v237_v62, %v1486_v35  ;;  %v473_v22 = vmul.f32 %v276_v1, %v1386_v24 }
  0xf4   :  { %v206_v18 = vrot.slane %v192_v5, %v1478_v27  ;;  %v173_v23 = vrot.slane %v157_v15, %v1478_v27  ;;  %v159_v0 = vcombine.high %v157_v15, %v157_v15  ;;  %v239_v50 = vcombine.high %v229_v59, %v229_v59 }
  0xf5   :  { %353 = vadd.xlane.f32.xlu0 %v329_v63  ;;  %v330_v7 = vmul.f32 %v280_v6, %v1356_v9  ;;  %v331_v8 = vmul.f32 %v284_v10, %v1364_v13  ;;  %v252_v9 = vrot.slane %v188_v14, %v1486_v35  ;;  %v474_v13 = vmul.f32 %v280_v6, %v1388_v25  ;;  %v386_v6 = vpop.xlane.xlu1 %385  ;;  %v402_v14 = vpop.xlane.xlu0 %401 }
  0xf6   :  { %v222_v20 = vrot.slane %v206_v18, %v1478_v27  ;;  %v260_v38 = vrot.slane %v173_v23, %v1486_v35  ;;  %v208_v51 = vcombine.high %v206_v18, %v206_v18  ;;  %v288_v55 = vrot.slane %v239_v50, %v1486_v35 }
  0xf7   :  { %355 = vadd.xlane.f32.xlu1 %v330_v7  ;;  %v323_v34 = vmul.f32 %v252_v9, %v1362_v12  ;;  %v467_v21 = vmul.f32 %v252_v9, %v1402_v32  ;;  %v475_v12 = vmul.f32 %v284_v10, %v1404_v33  ;;  %v324_v47 = vmul.f32 %v256_v54, %v1370_v16 }
  0xf8   :  { %v292_v39 = vrot.slane %v222_v20, %v1486_v35  ;;  %v325_v24 = vmul.f32 %v260_v38, %v1394_v28  ;;  %v469_v25 = vmul.f32 %v260_v38, %v1434_v48  ;;  %v187_v28 = vrot.slane %v159_v0, %v1478_v27 }
  0xf9   :  { %481 = vadd.xlane.f32.xlu0 %v465_v11  ;;  %v236_v32 = vrot.slane %v208_v51, %v1478_v27  ;;  %v332_v58 = vmul.f32 %v288_v55, %v1372_v17  ;;  %v189_v59 = vcombine.high %v173_v23, %v173_v23  ;;  %v238_v62 = vcombine.high %v222_v20, %v222_v20  ;;  %v388_v10 = vpop.xlane.xlu1 %387  ;;  %v1555_v18 = vpop.xlane.xlu0 %389 }
  0xfa   :  { %v333_v42 = vmul.f32 %v292_v39, %v1396_v29  ;;  %v477_v29 = vmul.f32 %v292_v39, %v1436_v49  ;;  %v264_v33 = vrot.slane %v187_v28, %v1486_v35  ;;  %v468_v27 = vmul.f32 %v256_v54, %v1418_v40 }
  0xfb   :  { %357 = vadd.xlane.f32.xlu1 %v331_v8  ;;  %v296_v48 = vrot.slane %v236_v32, %v1486_v35  ;;  %v268_v16 = vrot.slane %v189_v59, %v1486_v35  ;;  %v476_v63 = vmul.f32 %v288_v55, %v1420_v41  ;;  %v300_v17 = vrot.slane %v238_v62, %v1486_v35 }
  0xfc   :  { %v326_v1 = vmul.f32 %v264_v33, %v1410_v36  ;;  %v191_v7 = vcombine.high %v187_v28, %v187_v28  ;;  %v240_v5 = vcombine.high %v236_v32, %v236_v32  ;;  %v417_v55 = vmax.f32 %v386_v6, 1e-24 }
  0xfd   :  { %497 = vadd.xlane.f32.xlu0 %v473_v22  ;;  %v334_v49 = vmul.f32 %v296_v48, %v1412_v37  ;;  %v327_v2 = vmul.f32 %v268_v16, %v1426_v44  ;;  %v335_v36 = vmul.f32 %v300_v17, %v1428_v45  ;;  %v470_v37 = vmul.f32 %v264_v33, %v1450_v56  ;;  %v404_v15 = vpop.xlane.xlu1 %403  ;;  %v1558_v22 = vld [vmem:[#allocation7 + $0x8] sm:$0xff] }
  0xfe   :  { %v478_v40 = vmul.f32 %v296_v48, %v1452_v57  ;;  %v471_v41 = vmul.f32 %v268_v16, %v1458_v60  ;;  %v272_v11 = vrot.slane %v191_v7, %v1486_v35  ;;  %v479_v44 = vmul.f32 %v300_v17, %v1460_v61  ;;  %v1553_v57 = vld [vmem:[#allocation7] sm:$0xff] }
  0xff   :  { %483 = vadd.xlane.f32.xlu1 %v466_v30  ;;  %v304_v45 = vrot.slane %v240_v5, %v1486_v35  ;;  %v123_v35 = vmul.f32 %v1553_v57, %v1553_v57  ;;  %v418_v32 = vmax.f32 %v388_v10, 1e-24  ;;  %968 = vrsqrt.f32 %v417_v55 }
 0x100   :  { %v328_v56 = vmul.f32 %v272_v11, %v1442_v52  ;;  %v472_v60 = vmul.f32 %v272_v11, %v1466_v3  ;;  %v124_v52 = vmul.f32 %v1558_v22, %v1558_v22  ;;  %v425_v33 = vmax.f32 %v402_v14, 1e-24 }
 0x101   :  { %341 = vadd.xlane.f32.xlu0 %v323_v34  ;;  %v336_v8 = vmul.f32 %v304_v45, %v1444_v53  ;;  %v406_v9 = vpop.xlane.xlu1 %405  ;;  %v480_v61 = vmul.f32 %v304_v45, %v1468_v4  ;;  %v1565_v53 = vpop.xlane.xlu0 %391  ;;  %970 = vrsqrt.f32 %v418_v32  ;;  %v426_v48 = vmax.f32 %v404_v15, 1e-24 }
 0x102   :  { %972 = vrsqrt.f32 %v425_v33 }
 0x103   :  { %499 = vadd.xlane.f32.xlu1 %v474_v13  ;;  %974 = vrsqrt.f32 %v426_v48 }
 0x105   :  { %345 = vadd.xlane.f32.xlu0 %v325_v24  ;;  %v1567_v23 = vpop.xlane.xlu1 %407  ;;  %v530_v3 = vpop.xlane.xlu0 %529 }
 0x107   :  { %361 = vadd.xlane.f32.xlu1 %v333_v42 }
 0x109   :  { %485 = vadd.xlane.f32.xlu0 %v467_v21  ;;  %v532_v30 = vpop.xlane.xlu1 %531  ;;  %v546_v20 = vpop.xlane.xlu0 %545 }
 0x10a   :  { %v969_v16 = vpop.eup %968 }
 0x10b   :  { %501 = vadd.xlane.f32.xlu1 %v475_v12 }
 0x10d   :  { %489 = vadd.xlane.f32.xlu0 %v469_v25  ;;  %v548_v34 = vpop.xlane.xlu1 %547  ;;  %v1569_v38 = vpop.xlane.xlu0 %393 }
 0x10e   :  { %v570_v5 = vmax.f32 %v548_v34, 1e-24  ;;  %v421_v45 = vmax.f32 %v1569_v38, 1e-24 }
 0x10f   :  { %505 = vadd.xlane.f32.xlu1 %v477_v29 }
 0x111   :  { %343 = vadd.xlane.f32.xlu0 %v324_v47  ;;  %v1571_v4 = vpop.xlane.xlu1 %409  ;;  %v1573_v13 = vpop.xlane.xlu0 %533 }
 0x113   :  { %359 = vadd.xlane.f32.xlu1 %v332_v58 }
 0x115   :  { %347 = vadd.xlane.f32.xlu0 %v326_v1  ;;  %v1575_v39 = vpop.xlane.xlu1 %549  ;;  %v1577_v24 = vpop.xlane.xlu0 %395  ;;  %v561_v1 = vmax.f32 %v530_v3, 1e-24 }
 0x117   :  { %363 = vadd.xlane.f32.xlu1 %v334_v49  ;;  %v427_v49 = vmax.f32 %v406_v9, 1e-24  ;;  %976 = vrsqrt.f32 %v561_v1  ;;  %v429_v9 = vmax.f32 %v1571_v4, 1e-24 }
 0x119   :  { %487 = vadd.xlane.f32.xlu0 %v468_v27  ;;  %v1579_v42 = vpop.xlane.xlu1 %411  ;;  %v1581_v21 = vpop.xlane.xlu0 %535  ;;  %v569_v27 = vmax.f32 %v546_v20, 1e-24  ;;  %978 = vrsqrt.f32 %v427_v49 }
 0x11b   :  { %503 = vadd.xlane.f32.xlu1 %v476_v63  ;;  %v562_v63 = vmax.f32 %v532_v30, 1e-24  ;;  %980 = vrsqrt.f32 %v569_v27  ;;  %v563_v30 = vmax.f32 %v1573_v13, 1e-24 }
 0x11d   :  { %349 = vadd.xlane.f32.xlu0 %v327_v2  ;;  %v1583_v46 = vpop.xlane.xlu1 %551  ;;  %v1585_v0 = vpop.xlane.xlu0 %397  ;;  %982 = vrsqrt.f32 %v562_v63 }
 0x11e   :  { %v971_v2 = vpop.eup %970 }
 0x11f   :  { %365 = vadd.xlane.f32.xlu1 %v335_v36  ;;  %v419_v36 = vmax.f32 %v1555_v18, 1e-24 }
 0x121   :  { %491 = vadd.xlane.f32.xlu0 %v470_v37  ;;  %v1587_v12 = vpop.xlane.xlu1 %413  ;;  %v1589_v50 = vpop.xlane.xlu0 %537 }
 0x122   :  { %v565_v49 = vmax.f32 %v1589_v50, 1e-24  ;;  %v420_v50 = vmax.f32 %v1565_v53, 1e-24 }
 0x123   :  { %507 = vadd.xlane.f32.xlu1 %v478_v40  ;;  %v973_v40 = vpop.eup %972 }
 0x125   :  { %493 = vadd.xlane.f32.xlu0 %v471_v41  ;;  %v1591_v51 = vpop.xlane.xlu1 %553  ;;  %v1593_v25 = vpop.xlane.xlu0 %399 }
 0x127   :  { %509 = vadd.xlane.f32.xlu1 %v479_v44  ;;  %v975_v44 = vpop.eup %974 }
 0x128   :  { %v977_v18 = vpop.eup %976 }
 0x129   :  { %351 = vadd.xlane.f32.xlu0 %v328_v56  ;;  %v1595_v54 = vpop.xlane.xlu1 %415  ;;  %v1597_v28 = vpop.xlane.xlu0 %539 }
 0x12a   :  { %v979_v3 = vpop.eup %978 }
 0x12b   :  { %367 = vadd.xlane.f32.xlu1 %v336_v8  ;;  %v981_v55 = vpop.eup %980 }
 0x12c   :  { %v983_v1 = vpop.eup %982 }
 0x12d   :  { %495 = vadd.xlane.f32.xlu0 %v472_v60  ;;  %v1599_v29 = vpop.xlane.xlu1 %555  ;;  %v1601_v47 = vpop.xlane.xlu0 %541  ;;  %v658_v60 = vand.u32 127, %v147_v19  ;;  %v571_v19 = vmax.f32 %v1575_v39, 1e-24 }
 0x12f   :  { %511 = vadd.xlane.f32.xlu1 %v480_v61  ;;  %v1615_v32 = vsub.s32 %v658_v60, %v1475_v26 }
 0x131   :  { %125 = vadd.xlane.f32.xlu0 %v123_v35  ;;  %v1603_v58 = vpop.xlane.xlu1 %557  ;;  %v1605_v59 = vpop.xlane.xlu0 %543 }
 0x133   :  { %127 = vadd.xlane.f32.xlu1 %v124_v52 }
 0x135   :  { %v1607_v62 = vpop.xlane.xlu1 %559 }
 0x17e   :  { %v338_v17 = vpop.xlane.xlu0 %337 }
 0x17f   :  { %v449_v6 = vmul.f32 %v969_v16, %v338_v17 }
 0x180   :  { %v340_v37 = vpop.xlane.xlu1 %339 }
 0x181   :  { %v609_v7 = vmul.f32 1.442695, %v449_v6  ;;  %v450_v10 = vmul.f32 %v971_v2, %v340_v37  ;;  %v573_v6 = vmax.f32 %v1591_v51, 1e-24 }
 0x182   :  { %v354_v41 = vpop.xlane.xlu0 %353 }
 0x183   :  { %984 = vpow2.f32 %v609_v7  ;;  %v611_v11 = vmul.f32 1.442695, %v450_v10  ;;  %v457_v14 = vmul.f32 %v973_v40, %v354_v41 }
 0x184   :  { %986 = vrsqrt.f32 %v419_v36  ;;  %v356_v15 = vpop.xlane.xlu1 %355 }
 0x185   :  { %988 = vpow2.f32 %v611_v11  ;;  %v625_v56 = vmul.f32 1.442695, %v457_v14  ;;  %v458_v8 = vmul.f32 %v975_v44, %v356_v15  ;;  %v428_v44 = vmax.f32 %v1567_v23, 1e-24 }
 0x186   :  { %990 = vrsqrt.f32 %v570_v5  ;;  %v482_v61 = vpop.xlane.xlu0 %481 }
 0x187   :  { %992 = vpow2.f32 %v625_v56  ;;  %v627_v35 = vmul.f32 1.442695, %v458_v8  ;;  %v593_v52 = vmul.f32 %v977_v18, %v482_v61 }
 0x188   :  { %994 = vrsqrt.f32 %v421_v45  ;;  %v358_v20 = vpop.xlane.xlu1 %357 }
 0x189   :  { %996 = vpow2.f32 %v627_v35  ;;  %v755_v34 = vmul.f32 1.442695, %v593_v52  ;;  %v459_v38 = vmul.f32 %v979_v3, %v358_v20  ;;  %v430_v20 = vmax.f32 %v1579_v42, 1e-24 }
 0x18a   :  { %998 = vrsqrt.f32 %v429_v9  ;;  %v498_v4 = vpop.xlane.xlu0 %497  ;;  %v422_v9 = vmax.f32 %v1577_v24, 1e-24 }
 0x18b   :  { %1000 = vpow2.f32 %v755_v34  ;;  %v629_v33 = vmul.f32 1.442695, %v459_v38  ;;  %v601_v48 = vmul.f32 %v981_v55, %v498_v4 }
 0x18c   :  { %1002 = vrsqrt.f32 %v563_v30  ;;  %v484_v13 = vpop.xlane.xlu1 %483 }
 0x18d   :  { %v985_v27 = vpop.eup %984  ;;  %1004 = vpow2.f32 %v629_v33  ;;  %v771_v16 = vmul.f32 1.442695, %v601_v48  ;;  %v594_v63 = vmul.f32 %v983_v1, %v484_v13  ;;  %v564_v48 = vmax.f32 %v1581_v21, 1e-24 }
 0x18e   :  { %v987_v17 = vpop.eup %986  ;;  %1006 = vrsqrt.f32 %v571_v19  ;;  %v662_v2 = vrot.slane %v985_v27, %v1615_v32  ;;  %v342_v39 = vpop.xlane.xlu0 %341 }
 0x18f   :  { %v989_v36 = vpop.eup %988  ;;  %1008 = vpow2.f32 %v771_v16  ;;  %v757_v37 = vmul.f32 1.442695, %v594_v63  ;;  %v451_v7 = vmul.f32 %v987_v17, %v342_v39  ;;  %v572_v63 = vmax.f32 %v1583_v46, 1e-24 }
 0x190   :  { %v991_v10 = vpop.eup %990  ;;  %1010 = vrsqrt.f32 %v565_v49  ;;  %v666_v40 = vrot.slane %v989_v36, %v1615_v32  ;;  %v500_v5 = vpop.xlane.xlu1 %499 }
 0x191   :  { %v993_v41 = vpop.eup %992  ;;  %1012 = vpow2.f32 %v757_v37  ;;  %v613_v11 = vmul.f32 1.442695, %v451_v7  ;;  %v602_v14 = vmul.f32 %v991_v10, %v500_v5  ;;  %v423_v7 = vmax.f32 %v1585_v0, 1e-24 }
 0x192   :  { %v995_v51 = vpop.eup %994  ;;  %1014 = vrsqrt.f32 %v573_v6  ;;  %v694_v45 = vrot.slane %v993_v41, %v1615_v32  ;;  %v346_v15 = vpop.xlane.xlu0 %345  ;;  %v1626_v56 = vsel %vm723_vm0, %v666_v40, %v662_v2 }
 0x193   :  { %v997_v8 = vpop.eup %996  ;;  %1016 = vpow2.f32 %v613_v11  ;;  %v773_v53 = vmul.f32 1.442695, %v602_v14  ;;  %v453_v18 = vmul.f32 %v995_v51, %v346_v15  ;;  %v431_v11 = vmax.f32 %v1587_v12, 1e-24 }
 0x194   :  { %v999_v60 = vpop.eup %998  ;;  %1018 = vrsqrt.f32 %v420_v50  ;;  %v698_v61 = vrot.slane %v997_v8, %v1615_v32  ;;  %v362_v35 = vpop.xlane.xlu1 %361 }
 0x195   :  { %v1001_v52 = vpop.eup %1000  ;;  %1020 = vpow2.f32 %v773_v53  ;;  %v617_v23 = vmul.f32 1.442695, %v453_v18  ;;  %v461_v3 = vmul.f32 %v999_v60, %v362_v35  ;;  %v566_v53 = vmax.f32 %v1597_v28, 1e-24 }
 0x196   :  { %v1003_v30 = vpop.eup %1002  ;;  %1022 = vrsqrt.f32 %v428_v44  ;;  %v806_v34 = vrot.slane %v1001_v52, %v1615_v32  ;;  %v486_v38 = vpop.xlane.xlu0 %485  ;;  %v737_v55 = vsel %vm723_vm0, %v698_v61, %v694_v45 }
 0x197   :  { %v1005_v19 = vpop.eup %1004  ;;  %1024 = vpow2.f32 %v617_v23  ;;  %v633_v4 = vmul.f32 1.442695, %v461_v3  ;;  %v595_v24 = vmul.f32 %v1003_v30, %v486_v38  ;;  %v574_v23 = vmax.f32 %v1599_v29, 1e-24 }
 0x198   :  { %v1007_v33 = vpop.eup %1006  ;;  %1026 = vrsqrt.f32 %v422_v9  ;;  %v702_v1 = vrot.slane %v1005_v19, %v1615_v32  ;;  %v502_v49 = vpop.xlane.xlu1 %501 }
 0x199   :  { %v1009_v13 = vpop.eup %1008  ;;  %1028 = vpow2.f32 %v633_v4  ;;  %v759_v42 = vmul.f32 1.442695, %v595_v24  ;;  %v603_v27 = vmul.f32 %v1007_v33, %v502_v49 }
 0x19a   :  { %v1011_v16 = vpop.eup %1010  ;;  %1030 = vrsqrt.f32 %v430_v20  ;;  %v838_v17 = vrot.slane %v1009_v13, %v1615_v32  ;;  %v490_v6 = vpop.xlane.xlu0 %489  ;;  %v1638_v2 = vsel %vm725_vm1, %v702_v1, %v737_v55  ;;  %v567_v55 = vmax.f32 %v1601_v47, 1e-24 }
 0x19b   :  { %v1013_v39 = vpop.eup %1012  ;;  %1032 = vpow2.f32 %v759_v42  ;;  %v775_v21 = vmul.f32 1.442695, %v603_v27  ;;  %v597_v36 = vmul.f32 %v1011_v16, %v490_v6  ;;  %v575_v1 = vmax.f32 %v1603_v58, 1e-24 }
 0x19c   :  { %v1015_v37 = vpop.eup %1014  ;;  %1034 = vrsqrt.f32 %v564_v48  ;;  %v810_v10 = vrot.slane %v1013_v39, %v1615_v32  ;;  %v506_v50 = vpop.xlane.xlu1 %505 }
 0x19d   :  { %v1017_v40 = vpop.eup %1016  ;;  %1036 = vpow2.f32 %v775_v21  ;;  %v763_v46 = vmul.f32 1.442695, %v597_v36  ;;  %v605_v5 = vmul.f32 %v1015_v37, %v506_v50 }
 0x19e   :  { %v1019_v41 = vpop.eup %1018  ;;  %1038 = vrsqrt.f32 %v572_v63  ;;  %v670_v14 = vrot.slane %v1017_v40, %v1615_v32  ;;  %v344_v51 = vpop.xlane.xlu0 %343  ;;  %v867_v44 = vsel %vm723_vm0, %v810_v10, %v806_v34  ;;  %v424_v63 = vmax.f32 %v1593_v25, 1e-24 }
 0x19f   :  { %v1021_v45 = vpop.eup %1020  ;;  %1040 = vpow2.f32 %v763_v46  ;;  %v779_v15 = vmul.f32 1.442695, %v605_v5  ;;  %v452_v0 = vmul.f32 %v1019_v41, %v344_v51 }
 0x1a0   :  { %v1023_v8 = vpop.eup %1022  ;;  %1042 = vrsqrt.f32 %v423_v7  ;;  %v842_v18 = vrot.slane %v1021_v45, %v1615_v32  ;;  %v360_v60 = vpop.xlane.xlu1 %359  ;;  %v1649_v9 = vsel %vm725_vm1, %v670_v14, %v1626_v56  ;;  %v432_v7 = vmax.f32 %v1595_v54, 1e-24 }
 0x1a1   :  { %v1651_v12 = vpop.eup %1024  ;;  %1044 = vpow2.f32 %v779_v15  ;;  %v615_v61 = vmul.f32 1.442695, %v452_v0  ;;  %v460_v35 = vmul.f32 %v1023_v8, %v360_v60  ;;  %v576_v0 = vmax.f32 %v1607_v62, 1e-24 }
 0x1a2   :  { %v1027_v52 = vpop.eup %1026  ;;  %1046 = vrsqrt.f32 %v431_v11  ;;  %v678_v3 = vrot.slane %v1651_v12, %v1615_v32  ;;  %v348_v28 = vpop.xlane.xlu0 %347  ;;  %v874_v30 = vsel %vm723_vm0, %v842_v18, %v838_v17  ;;  %v568_v11 = vmax.f32 %v1605_v59, 1e-24 }
 0x1a3   :  { %v1657_v20 = vpop.eup %1028  ;;  %1048 = vpow2.f32 %v615_v61  ;;  %v631_v56 = vmul.f32 1.442695, %v460_v35  ;;  %v454_v34 = vmul.f32 %v1027_v52, %v348_v28 }
 0x1a4   :  { %v1031_v38 = vpop.eup %1030  ;;  %1050 = vrsqrt.f32 %v566_v53  ;;  %v710_v19 = vrot.slane %v1657_v20, %v1615_v32  ;;  %v364_v4 = vpop.xlane.xlu1 %363 }
 0x1a5   :  { %v1033_v29 = vpop.eup %1032  ;;  %1052 = vpow2.f32 %v631_v56  ;;  %v619_v24 = vmul.f32 1.442695, %v454_v34  ;;  %v462_v33 = vmul.f32 %v1031_v38, %v364_v4 }
 0x1a6   :  { %v1035_v48 = vpop.eup %1034  ;;  %1054 = vrsqrt.f32 %v574_v23  ;;  %v814_v49 = vrot.slane %v1033_v29, %v1615_v32  ;;  %v488_v13 = vpop.xlane.xlu0 %487 }
 0x1a7   :  { %v1037_v42 = vpop.eup %1036  ;;  %1056 = vpow2.f32 %v619_v24  ;;  %v635_v27 = vmul.f32 1.442695, %v462_v33  ;;  %v596_v16 = vmul.f32 %v1035_v48, %v488_v13 }
 0x1a8   :  { %v1039_v47 = vpop.eup %1038  ;;  %1058 = vrsqrt.f32 %v567_v55  ;;  %v846_v17 = vrot.slane %v1037_v42, %v1615_v32  ;;  %v504_v6 = vpop.xlane.xlu1 %503  ;;  %v1667_v39 = vsel %vm725_vm1, %v814_v49, %v867_v44 }
 0x1a9   :  { %v1669_v21 = vpop.eup %1040  ;;  %1060 = vpow2.f32 %v635_v27  ;;  %v761_v58 = vmul.f32 1.442695, %v596_v16  ;;  %v604_v36 = vmul.f32 %v1039_v47, %v504_v6 }
 0x1aa   :  { %v1043_v37 = vpop.eup %1042  ;;  %1062 = vrsqrt.f32 %v575_v1  ;;  %v822_v10 = vrot.slane %v1669_v21, %v1615_v32  ;;  %v350_v25 = vpop.xlane.xlu0 %349  ;;  %v1675_v50 = vsel %vm725_vm1, %v846_v17, %v874_v30 }
 0x1ab   :  { %v1677_v40 = vpop.eup %1044  ;;  %1064 = vpow2.f32 %v761_v58  ;;  %v777_v46 = vmul.f32 1.442695, %v604_v36  ;;  %v455_v5 = vmul.f32 %v1043_v37, %v350_v25 }
 0x1ac   :  { %v1047_v41 = vpop.eup %1046  ;;  %1066 = vrsqrt.f32 %v424_v63  ;;  %v854_v54 = vrot.slane %v1677_v40, %v1615_v32  ;;  %v366_v14 = vpop.xlane.xlu1 %365 }
 0x1ad   :  { %v1049_v51 = vpop.eup %1048  ;;  %1068 = vpow2.f32 %v777_v46  ;;  %v621_v44 = vmul.f32 1.442695, %v455_v5  ;;  %v463_v45 = vmul.f32 %v1047_v41, %v366_v14 }
 0x1ae   :  { %v1051_v15 = vpop.eup %1050  ;;  %1070 = vrsqrt.f32 %v432_v7  ;;  %v674_v8 = vrot.slane %v1049_v51, %v1615_v32  ;;  %v492_v53 = vpop.xlane.xlu0 %491 }
 0x1af   :  { %v1053_v18 = vpop.eup %1052  ;;  %1072 = vpow2.f32 %v621_v44  ;;  %v637_v59 = vmul.f32 1.442695, %v463_v45  ;;  %v598_v60 = vmul.f32 %v1051_v15, %v492_v53 }
 0x1b0   :  { %v1055_v61 = vpop.eup %1054  ;;  %1074 = vrsqrt.f32 %v568_v11  ;;  %v706_v35 = vrot.slane %v1053_v18, %v1615_v32  ;;  %v508_v52 = vpop.xlane.xlu1 %507  ;;  %v728_v23 = vsel %vm727_vm2, %v674_v8, %v1649_v9 }
 0x1b1   :  { %v1057_v28 = vpop.eup %1056  ;;  %1076 = vpow2.f32 %v637_v59  ;;  %v765_v62 = vmul.f32 1.442695, %v598_v60  ;;  %v606_v30 = vmul.f32 %v1055_v61, %v508_v52  ;;  %v730_v56 = vsel %vm729_vm3, %v678_v3, %v728_v23 }
 0x1b2   :  { %v1059_v34 = vpop.eup %1058  ;;  %1078 = vrsqrt.f32 %v576_v0  ;;  %v494_v38 = vpop.xlane.xlu0 %493  ;;  %v682_v55 = vrot.slane %v1057_v28, %v1615_v32  ;;  %v739_v4 = vsel %vm727_vm2, %v706_v35, %v1638_v2 }
 0x1b3   :  { %v1061_v29 = vpop.eup %1060  ;;  %1080 = vpow2.f32 %v765_v62  ;;  %v781_v9 = vmul.f32 1.442695, %v606_v30  ;;  %v599_v24 = vmul.f32 %v1059_v34, %v494_v38  ;;  %v740_v33 = vsel %vm729_vm3, %v710_v19, %v739_v4 }
 0x1b4   :  { %v1063_v12 = vpop.eup %1062  ;;  %v510_v48 = vpop.xlane.xlu1 %509  ;;  %v732_v3 = vsel %vm731_vm4, %v682_v55, %v730_v56  ;;  %v714_v1 = vrot.slane %v1061_v29, %v1615_v32 }
 0x1b5   :  { %v1065_v49 = vpop.eup %1064  ;;  %1082 = vpow2.f32 %v781_v9  ;;  %v767_v13 = vmul.f32 1.442695, %v599_v24  ;;  %v607_v42 = vmul.f32 %v1063_v12, %v510_v48 }
 0x1b6   :  { %v1067_v2 = vpop.eup %1066  ;;  %v818_v27 = vrot.slane %v1065_v49, %v1615_v32  ;;  %v352_v16 = vpop.xlane.xlu0 %351  ;;  %v741_v47 = vsel %vm731_vm4, %v714_v1, %v740_v33 }
 0x1b7   :  { %v1069_v63 = vpop.eup %1068  ;;  %1084 = vpow2.f32 %v767_v13  ;;  %v783_v20 = vmul.f32 1.442695, %v607_v42  ;;  %v456_v19 = vmul.f32 %v1067_v2, %v352_v16 }
 0x1b8   :  { %v1071_v17 = vpop.eup %1070  ;;  %v850_v6 = vrot.slane %v1069_v63, %v1615_v32  ;;  %v368_v58 = vpop.xlane.xlu1 %367  ;;  %v869_v36 = vsel %vm727_vm2, %v818_v27, %v1667_v39 }
 0x1b9   :  { %v1073_v37 = vpop.eup %1072  ;;  %1086 = vpow2.f32 %v783_v20  ;;  %v623_v7 = vmul.f32 1.442695, %v456_v19  ;;  %v464_v25 = vmul.f32 %v1071_v17, %v368_v58  ;;  %v870_v46 = vsel %vm729_vm3, %v822_v10, %v869_v36 }
 0x1ba   :  { %v1075_v5 = vpop.eup %1074  ;;  %v496_v41 = vpop.xlane.xlu0 %495  ;;  %v686_v11 = vrot.slane %v1073_v37, %v1615_v32  ;;  %v876_v14 = vsel %vm727_vm2, %v850_v6, %v1675_v50 }
 0x1bb   :  { %v1077_v51 = vpop.eup %1076  ;;  %1088 = vpow2.f32 %v623_v7  ;;  %v639_v44 = vmul.f32 1.442695, %v464_v25  ;;  %v600_v39 = vmul.f32 %v1075_v5, %v496_v41  ;;  %v877_v45 = vsel %vm729_vm3, %v854_v54, %v876_v14 }
 0x1bc   :  { %v1079_v15 = vpop.eup %1078  ;;  %v512_v21 = vpop.xlane.xlu1 %511  ;;  %v734_v10 = vsel %vm733_vm5, %v686_v11, %v732_v3  ;;  %v718_v0 = vrot.slane %v1077_v51, %v1615_v32 }
 0x1bd   :  { %v1081_v8 = vpop.eup %1080  ;;  %1090 = vpow2.f32 %v639_v44  ;;  %v769_v53 = vmul.f32 1.442695, %v600_v39  ;;  %v608_v18 = vmul.f32 %v1079_v15, %v512_v21 }
 0x1be   :  { %v126_v50 = vpop.xlane.xlu0 %125  ;;  %v742_v59 = vsel %vm733_vm5, %v718_v0, %v741_v47  ;;  %v826_v60 = vrot.slane %v1081_v8, %v1615_v32 }
 0x1bf   :  { %v1083_v61 = vpop.eup %1082  ;;  %1092 = vpow2.f32 %v769_v53  ;;  %v785_v40 = vmul.f32 1.442695, %v608_v18  ;;  %v129_v35 = vmax.f32 %v126_v50, 1e-24  ;;  %v917_v53 = vstv %s1760_s0  ;;  %s1233_s0 = smov [#allocation12]  }
 0x1c0   :  { %v128_v54 = vpop.xlane.xlu1 %127  ;;  %v871_v52 = vsel %vm731_vm4, %v826_v60, %v870_v46  ;;  %v858_v23 = vrot.slane %v1083_v61, %v1615_v32  ;;  %v913_v18 = vadd.s32 8, %v1475_v26  ;;  %vm918_vm8 = vcmp.lt.s32.totalorder %v1475_v26, %v917_v53  ;;  %s943_s6 = sshll.u32 %s1233_s0, 4  ;;  %s944_s6 = int_to_ptr.vmem [resolvable:$true] %s943_s6 }
 0x1c1   :  { %v1085_v28 = vpop.eup %1084  ;;  %1094 = vpow2.f32 %v785_v40  ;;  %v130_v62 = vmax.f32 %v128_v54, 1e-24  ;;  %s1196_s17 = scalar_lea.vmem %s944_s6, 128  ;;  %p1201_p5 = scmp.lt.s32.totalorder %s944_s6, %s944_s6 }
 0x1c2   :  { %1096 = vrsqrt.f32 %v129_v35  ;;  %v830_v30 = vrot.slane %v1085_v28, %v1615_v32  ;;  %v878_v56 = vsel %vm731_vm4, %v858_v23, %v877_v45  ;;  %vm919_vm9 = vcmp.lt.s32.totalorder %v913_v18, %v917_v53  ;;  %p1197_p4 = scmp.ne.s32.totalorder %s944_s6, %s1196_s17  ;;  %p1202_p6 = scmp.lt.s32.totalorder %s1196_s17, %s1196_s17 }
 0x1c3   :  { %v1087_v34 = vpop.eup %1086  ;;  %1098 = vrsqrt.f32 %v130_v62 }
 0x1c4   :  { %v872_v38 = vsel %vm733_vm5, %v830_v30, %v871_v52  ;;  %v862_v55 = vrot.slane %v1087_v34, %v1615_v32  ;;  %p1203_p7 = por %p1202_p6, %p1201_p5 }
 0x1c5   :  { %v1089_v4 = vpop.eup %1088 }
 0x1c6   :  { %v690_v29 = vrot.slane %v1089_v4, %v1615_v32  ;;  %v879_v9 = vsel %vm733_vm5, %v862_v55, %v878_v56  ;;  %p1204_p8 = pnand %p1203_p7, %p1197_p4 }
 0x1c7   :  { %v1091_v24 = vpop.eup %1090 }
 0x1c8   :  { %v736_v33 = vsel %vm735_vm6, %v690_v29, %v734_v10  ;;  %v722_v12 = vrot.slane %v1091_v24, %v1615_v32 }
 0x1c9   :  { %v1093_v48 = vpop.eup %1092  ;;  %v747_v3 = vsel %vm746_vm7, %v736_v33, 0.0 }
 0x1ca   :  { %748 = vadd.xlane.f32.xlu0 %v747_v3  ;;  %v743_v1 = vsel %vm735_vm6, %v722_v12, %v742_v59  ;;  %v834_v49 = vrot.slane %v1093_v48, %v1615_v32 }
 0x1cb   :  { %v1095_v13 = vpop.eup %1094  ;;  %v750_v42 = vsel %vm746_vm7, %v743_v1, 0.0 }
 0x1cc   :  { %v1097_v2 = vpop.eup %1096  ;;  %751 = vadd.xlane.f32.xlu1 %v750_v42  ;;  %v873_v27 = vsel %vm735_vm6, %v834_v49, %v872_v38  ;;  %v866_v16 = vrot.slane %v1095_v13, %v1615_v32 }
 0x1cd   :  { %v1099_v47 = vpop.eup %1098  ;;  %v883_v63 = vsel %vm746_vm7, %v873_v27, 0.0  ;;  %v133_v20 = vmul.f32 %v1097_v2, %v1553_v57 }
 0x1ce   :  { %884 = vadd.xlane.f32.xlu0 %v883_v63  ;;  %v880_v19 = vsel %vm735_vm6, %v866_v16, %v879_v9  ;;  %v134_v17 = vmul.f32 %v1099_v47, %v1558_v22 }
 0x1cf   :  { %v886_v6 = vsel %vm746_vm7, %v880_v19, 0.0  ;;  %v135_v58 = vmul.f32 %v133_v20, %v1481_v31 }
 0x1d0   :  { %887 = vadd.xlane.f32.xlu1 %v886_v6  ;;  %v136_v36 = vmul.f32 %v134_v17, %v1490_v43 }
 0x1d2   :  { %137 = vadd.xlane.f32.xlu0 %v135_v58 }
 0x1d4   :  { %139 = vadd.xlane.f32.xlu1 %v136_v36 }
 0x257   :  { %v749_v32 = vpop.xlane.xlu0 %748 }
 0x258   :  { %v753_v37 = vadd.f32 1.0, %v749_v32 }
 0x259   :  { %v752_v7 = vpop.xlane.xlu1 %751 }
 0x25a   :  { %v754_v25 = vadd.f32 1.0, %v752_v7  ;;  %1100 = vlog2.f32 %v753_v37 }
 0x25b   :  { %v885_v46 = vpop.xlane.xlu0 %884 }
 0x25c   :  { %v893_v57 = vadd.f32 %v885_v46, %v753_v37  ;;  %1102 = vlog2.f32 %v754_v25 }
 0x25d   :  { %v888_v5 = vpop.xlane.xlu1 %887 }
 0x25e   :  { %1104 = vlog2.f32 %v893_v57  ;;  %v894_v22 = vadd.f32 %v888_v5, %v754_v25 }
 0x25f   :  { %v138_v43 = vpop.xlane.xlu0 %137 }
 0x260   :  { %1106 = vlog2.f32 %v894_v22  ;;  %v899_v0 = vmul.f32 0.8, %v138_v43 }
 0x261   :  { %v140_v21 = vpop.xlane.xlu1 %139 }
 0x262   :  { %v900_v60 = vmul.f32 0.8, %v140_v21 }
 0x264   :  { %v1101_v41 = vpop.eup %1100 }
 0x265   :  { %v890_v31 = vmul.f32 0.6931472, %v1101_v41 }
 0x266   :  { %v1103_v11 = vpop.eup %1102 }
 0x267   :  { %v892_v39 = vmul.f32 0.6931472, %v1103_v11 }
 0x268   :  { %v1105_v14 = vpop.eup %1104 }
 0x269   :  { %v896_v51 = vmul.f32 0.6931472, %v1105_v14 }
 0x26a   :  { %v1107_v44 = vpop.eup %1106 }
 0x26b   :  { %v898_v45 = vmul.f32 0.6931472, %v1107_v44  ;;  %v901_v15 = vsub.f32 %v890_v31, %v896_v51 }
 0x26d   :  { %v903_v10 = vmul.f32 0.2, %v901_v15  ;;  %v902_v8 = vsub.f32 %v892_v39, %v898_v45 }
 0x26f   :  { %v905_v50 = vadd.f32 %v903_v10, %v899_v0  ;;  %v904_v59 = vmul.f32 0.2, %v902_v8 }
 0x271   :  { %v907_v61 = vsub.f32 0.0, %v905_v50  ;;  %v906_v40 = vadd.f32 %v904_v59, %v900_v60 }
 0x273   :  { %v908_v35 = vsub.f32 0.0, %v906_v40  ;;  %v920_v54 = vsel %vm918_vm8, %v907_v61, 0.0 }
 0x274   :  { %v923_v23 = vsel %vm922_vm10, %v920_v54, 0.0 }
 0x275   :  { %v921_v52 = vsel %vm919_vm9, %v908_v35, 0.0 }
 0x276   :  { %v924_v28 = vsel %vm922_vm10, %v921_v52, 0.0 }
 0x277   :  { %v925_v62 = vadd.f32 %v924_v28, %v923_v23 }
 0x279   :  { %926 = vadd.xlane.f32.xlu0 %v925_v62 }
 0x306   :  { %v927_v30 = vpop.xlane.xlu0 %926 }
 0x307   :  { %v928_v56 = vrot.slane %v927_v30, 4 }
 0x309   :  { %v929_v34 = vadd.f32 %v928_v56, %v927_v30 }
 0x30b   :  { %v930_v38 = vrot.slane %v929_v34, 2 }
 0x30d   :  { %v931_v55 = vadd.f32 %v930_v38, %v929_v34 }
 0x30f   :  { %v932_v4 = vrot.slane %v931_v55, 1 }
 0x311   :  { %v933_v29 = vadd.f32 %v932_v4, %v931_v55 }
 0x313   :  { %954 = vpush %v933_v29 }
 0x344   :  { %s955_s2 = spop %954 }
 0x345   :  { %v935_v26 = vstv %s955_s2 }
 0x346   :  { %936 = vst [vmem:[#allocation12] sm:$0xff] %v935_v26 }
 0x347   :  { %1207 = shalt.err (!%p1204_p8)
}
 0x348   :  { %s1208_s20 = scalar_lea.hbm %s1765_s5, 128 }
 0x349   :  { %p1209_p9 = scmp.ne.s32.totalorder %s1765_s5, %s1208_s20  ;;  %p1212_p10 = scmp.lt.u32.totalorder %s1208_s20, %s1765_s5 }
 0x34b   :  { %p1214_p11 = pnand %p1212_p10, %p1209_p9 }
 0x34d   :  { %1217 = shalt.err (!%p1214_p11)
}
 0x34e   :  { %946 = dma.vmem_to_hbm [thread:$0]  %s944_s6, 128, %s1765_s5, [#allocation6]  }
 0x34f   :  { %1224 = dma.done.wait [#allocation6], 128  }
 0x350   :  { %1225 = vsyncadd [#allocation6], 4294967168 }
 0x351   :  { %950 = vsyncpa [#allocation5], 1 }
 0x352   :  { %951 = vsyncpa [#allocation8], 1 }
 0x353   :  { %952 = vsyncpa [#allocation11], 1 }
 0x354   :  { %953 = vsyncpa [#allocation6], 1 }

</bundles_post_ra>
